<compile_context>
chip_gen: v7x
topology: tpu7x:2x2x1
jax: 0.10.0
libtpu: 0.0.40
codegen_flags: <defaults>
</compile_context>

<pallas_src>
import functools

import jax
import jax.numpy as jnp
from jax import lax
from jax.experimental import pallas as pl
from jax.experimental.pallas import tpu as pltpu


# ----------------------------------------------------------------------------
# Kernel
# ----------------------------------------------------------------------------
def _metalstm_kernel(w_ref, xt_ref, g_ref, s_ref, o_ref, *, input_size):
    """One MetaLSTMCell step on a lane-dense row block.

    w_ref : SMEM f32[2*(D+3)] = [WF_x(0..D-1), WF_c, WF_f, bF,
                                 WI_x(0..D-1), WI_c, WI_i, bI]
    xt_ref: VMEM f32[D, S, 128]   x, feature-major, rows on lanes
    g_ref : VMEM f32[S, 128]      grad (per-row scalar)
    s_ref : VMEM f32[3, S, 128]   previous state [f_prev, i_prev, c_prev]
    o_ref : VMEM f32[3, S, 128]   next state     [f_next, i_next, c_next]
    """
    D = input_size
    S = g_ref.shape[0]

    # Sub-chunk the block so accumulators stay register resident (no VMEM
    # spills of [S,128] f32 arrays -> keeps the vst slot off the critical path
    # on v7x where the per-step DMA budget is small).
    if S % 32 == 0:
        CH = 32
    elif S % 16 == 0:
        CH = 16
    elif S % 8 == 0:
        CH = 8
    else:
        CH = S                      # tiny block (whole array has < 8 row-chunks)
    n_chunks = S // CH

    def compute_rows(rows):
        fp = s_ref[0, rows, :]
        ip = s_ref[1, rows, :]
        c = s_ref[2, rows, :]
        g = g_ref[rows, :]

        # Recurrent + bias terms: SMEM scalars broadcast on the VPU.
        f_acc = w_ref[D] * c + w_ref[D + 1] * fp + w_ref[D + 2]
        i_acc = w_ref[2 * D + 3] * c + w_ref[2 * D + 4] * ip + w_ref[2 * D + 5]

        # Shared x contribution: each feature slab is read from VMEM once and
        # feeds both gates.  D ~ 20 -> static unroll of scalar multiply-adds.
        for d in range(D):
            xd = xt_ref[d, rows, :]
            f_acc = f_acc + w_ref[d] * xd
            i_acc = i_acc + w_ref[D + 3 + d] * xd

        c_next = jax.nn.sigmoid(f_acc) * c - jax.nn.sigmoid(i_acc) * g

        o_ref[0, rows, :] = f_acc
        o_ref[1, rows, :] = i_acc
        o_ref[2, rows, :] = c_next

    if n_chunks == 1:
        compute_rows(pl.ds(0, S))
    else:
        def chunk_body(ci, carry):
            r0 = pl.multiple_of(ci * CH, CH)
            compute_rows(pl.ds(r0, CH))
            return carry

        lax.fori_loop(0, n_chunks, chunk_body, 0)


# ----------------------------------------------------------------------------
# Boundary-layout helpers (only used at the edges of the training loop)
# ----------------------------------------------------------------------------
def pack_gate_weights(params):
    """[WF[:,0], bF, WI[:,0], bI] -> f32[2*(D+3)] for SMEM."""
    WF, WI, bF, bI = params["WF"], params["WI"], params["bF"], params["bI"]
    wf = jnp.concatenate([WF[:, 0], bF[0]])
    wi = jnp.concatenate([WI[:, 0], bI[0]])
    return jnp.concatenate([wf, wi]).astype(jnp.float32)


def x_to_slabs(x_all):
    """[N, D] -> [D, C, 128] lane-dense slabs.

    TODO(synk): the upstream LSTM producer should emit this layout directly so
    this transpose never appears on the per-step hot path.
    """
    N, D = x_all.shape
    C = pl.cdiv(N, 128)
    pad = C * 128 - N
    xp = x_all.astype(jnp.float32)
    if pad:
        xp = jnp.pad(xp, ((0, pad), (0, 0)))
    return jnp.transpose(xp).reshape(D, C, 128)


def vec_to_slab(v):
    """[N] or [N,1] -> [C, 128]."""
    v = v.reshape(-1).astype(jnp.float32)
    N = v.shape[0]
    C = pl.cdiv(N, 128)
    pad = C * 128 - N
    if pad:
        v = jnp.pad(v, (0, pad))
    return v.reshape(C, 128)


def state_to_slab(f_prev, i_prev, c_prev):
    return jnp.stack([vec_to_slab(f_prev), vec_to_slab(i_prev), vec_to_slab(c_prev)])


def slab_to_col(s, N):
    return s.reshape(-1)[:N].reshape(N, 1)


# ----------------------------------------------------------------------------
# Hot-path step (slab layout in, slab layout out, state aliased in place)
# ----------------------------------------------------------------------------
def _auto_block_c(C):
    # Aim for ~8 grid steps (keeps both v7x TensorCores busy via the single
    # "parallel" axis) while capping the per-step footprint (256 row-chunks
    # = 32768 rows, ~7 MiB double-buffered VMEM: safe on v5e/v6e/v7x).
    bc = -(-C // 8)                 # cdiv(C, 8)
    bc = -(-bc // 8) * 8            # round up to a multiple of 8 (sublane tile)
    return max(8, min(256, bc))


def metalstm_cell_step_slab(w_pack, xt, grad_slab, state, *, block_c=None):
    """One MetaLSTMCell step with everything already in slab layout.

    w_pack   : f32[2*(D+3)]    (pack_gate_weights)
    xt       : f32[D, C, 128]  x, feature-major slabs
    grad_slab: f32[C, 128]
    state    : f32[3, C, 128]  [f_prev, i_prev, c_prev]
    returns  : f32[3, C, 128]  [f_next, i_next, c_next] (HBM-aliased to state)
    """
    D, C, L = xt.shape
    assert L == 128
    assert grad_slab.shape == (C, 128) and state.shape == (3, C, 128)

    bc = _auto_block_c(C) if block_c is None else block_c
    if C > bc:
        assert bc % 8 == 0, "block_c must be a multiple of 8"
        S = bc
    else:
        S = C
    grid = (pl.cdiv(C, S),)

    slab_spec = pl.BlockSpec((S, 128), lambda i: (i, 0))
    state_spec = pl.BlockSpec((3, S, 128), lambda i: (0, i, 0))
    x_spec = pl.BlockSpec((D, S, 128), lambda i: (0, i, 0))
    smem_spec = pl.BlockSpec(memory_space=pltpu.MemorySpace.SMEM)

    # Explicit scoped-VMEM budget: 2x (x + state_in + grad + state_out) blocks
    # plus headroom (~11 MiB at S=256, D=20 -> under every generation's limit).
    block_bytes = 4 * S * 128 * (D + 3 + 1 + 3)
    vmem_limit = min(2 * block_bytes + (4 << 20), 64 * 1024 * 1024)

    return pl.pallas_call(
        functools.partial(_metalstm_kernel, input_size=D),
        out_shape=jax.ShapeDtypeStruct((3, C, 128), jnp.float32),
        grid=grid,
        in_specs=[
            smem_spec,      # packed gate weights + biases (SMEM)
            x_spec,         # x slabs
            slab_spec,      # grad
            state_spec,     # previous state [f, i, c]
        ],
        out_specs=state_spec,
        input_output_aliases={3: 0},   # state buffer updated in place
        compiler_params=pltpu.CompilerParams(
            dimension_semantics=("parallel",),
            vmem_limit_bytes=int(vmem_limit)),
    )(w_pack, xt, grad_slab, state)


# ----------------------------------------------------------------------------
# Drop-in compatibility wrapper (natural layout in / out, like the nn.Module)
# ----------------------------------------------------------------------------
@functools.partial(jax.jit, static_argnames=("block_c",))
def metalstm_cell_forward(params, x_all, grad, hx=None, *, block_c=None):
    N, D = x_all.shape
    H = params["WF"].shape[1]
    if H != 1:
        # TODO(synk): general H>1 path (the module spec says hidden_size should be 1).
        raise NotImplementedError("lane-dense kernel is specialised to hidden_size == 1")

    if hx is None:
        f_prev = jnp.zeros((N, H), jnp.float32)
        i_prev = jnp.zeros((N, H), jnp.float32)
        c_prev = params["cI"]
    else:
        f_prev, i_prev, c_prev = hx

    w_pack = pack_gate_weights(params)
    xt = x_to_slabs(x_all)
    g_slab = vec_to_slab(grad)
    state = state_to_slab(f_prev, i_prev, c_prev)

    state_next = metalstm_cell_step_slab(w_pack, xt, g_slab, state, block_c=block_c)

    f_next = slab_to_col(state_next[0], N)
    i_next = slab_to_col(state_next[1], N)
    c_next = slab_to_col(state_next[2], N)
    return c_next[:, 0], [f_next, i_next, c_next]


# ----------------------------------------------------------------------------
# Reference / init / tests
# ----------------------------------------------------------------------------
def init_params(key, input_size, hidden_size, n_learner_params):
    """Deterministic init mirroring reset_parameters()."""
    k_wf, k_wi, k_ci, k_bi, k_bf = jax.random.split(key, 5)
    WF = jax.random.uniform(k_wf, (input_size + 2, hidden_size),
                            minval=-0.01, maxval=0.01, dtype=jnp.float32)
    WI = jax.random.uniform(k_wi, (input_size + 2, hidden_size),
                            minval=-0.01, maxval=0.01, dtype=jnp.float32)
    cI = jax.random.uniform(k_ci, (n_learner_params, 1),
                            minval=-0.01, maxval=0.01, dtype=jnp.float32)
    bF = jax.random.uniform(k_bf, (1, hidden_size),
                            minval=4.0, maxval=6.0, dtype=jnp.float32)
    bI = jax.random.uniform(k_bi, (1, hidden_size),
                            minval=-5.0, maxval=-4.0, dtype=jnp.float32)
    return {"WF": WF, "WI": WI, "cI": cI, "bF": bF, "bI": bI}


def reference_forward(params, x_all, grad, f_prev, i_prev, c_prev):
    """Pure-JAX reference (mirrors the PyTorch forward)."""
    f_next = jnp.concatenate((x_all, c_prev, f_prev), 1) @ params["WF"] + params["bF"]
    i_next = jnp.concatenate((x_all, c_prev, i_prev), 1) @ params["WI"] + params["bI"]
    g = grad.reshape(-1, 1)
    c_next = jax.nn.sigmoid(f_next) * c_prev - jax.nn.sigmoid(i_next) * g
    return jnp.squeeze(c_next), [f_next, i_next, c_next]


def _check(c_next, fic, c_ref, fic_ref, n):
    f_next, i_next, c_full = fic
    f_ref, i_ref, c_full_ref = fic_ref
    assert c_next.shape == (n,)
    assert jnp.allclose(c_next, c_ref, atol=1e-5, rtol=1e-5)
    assert jnp.allclose(f_next, f_ref, atol=1e-5, rtol=1e-5)
    assert jnp.allclose(i_next, i_ref, atol=1e-5, rtol=1e-5)
    assert jnp.allclose(c_full, c_full_ref, atol=1e-5, rtol=1e-5)


if __name__ == "__main__":
    input_size = 20
    hidden_size = 1
    key = jax.random.PRNGKey(0)

    # --- Test A: N multiple of 128, hx=None path (uses cI), single block ----
    n_a = 256
    k_par, k_x, k_g, key = jax.random.split(key, 4)
    params = init_params(k_par, input_size, hidden_size, n_a)
    x_all = jax.random.normal(k_x, (n_a, input_size), jnp.float32)
    grad = jax.random.normal(k_g, (n_a,), jnp.float32)

    out_a = metalstm_cell_forward(params, x_all, grad)   # hx=None
    jax.block_until_ready(out_a)
    c_a, fic_a = out_a
    c_ref, fic_ref = reference_forward(
        params, x_all, grad,
        jnp.zeros((n_a, hidden_size), jnp.float32),
        jnp.zeros((n_a, hidden_size), jnp.float32),
        params["cI"])
    _check(c_a, fic_a, c_ref, fic_ref, n_a)

    # --- Test B: ragged N (not a multiple of 128), explicit hx --------------
    n_b = 1000
    k_par, k_x, k_g, k_f, k_i, k_c, key = jax.random.split(key, 7)
    params_b = init_params(k_par, input_size, hidden_size, n_b)
    x_b = jax.random.normal(k_x, (n_b, input_size), jnp.float32)
    g_b = jax.random.normal(k_g, (n_b,), jnp.float32)
    f_b = 0.1 * jax.random.normal(k_f, (n_b, hidden_size), jnp.float32)
    i_b = 0.1 * jax.random.normal(k_i, (n_b, hidden_size), jnp.float32)
    c_b = 0.1 * jax.random.normal(k_c, (n_b, 1), jnp.float32)

    out_b = metalstm_cell_forward(params_b, x_b, g_b, [f_b, i_b, c_b])
    jax.block_until_ready(out_b)
    c_rb, fic_rb = reference_forward(params_b, x_b, g_b, f_b, i_b, c_b)
    _check(out_b[0], out_b[1], c_rb, fic_rb, n_b)

    # --- Test C: multi-block grid (partial last block) via small block_c ----
    n_c = 2560   # C = 20 row-chunks, block_c=16 -> grid of 2 with a partial block
    k_par, k_x, k_g, k_f, k_i, k_c, key = jax.random.split(key, 7)
    params_c = init_params(k_par, input_size, hidden_size, n_c)
    x_c = jax.random.normal(k_x, (n_c, input_size), jnp.float32)
    g_c = jax.random.normal(k_g, (n_c,), jnp.float32)
    f_c = 0.1 * jax.random.normal(k_f, (n_c, hidden_size), jnp.float32)
    i_c = 0.1 * jax.random.normal(k_i, (n_c, hidden_size), jnp.float32)
    c_c = 0.1 * jax.random.normal(k_c, (n_c, 1), jnp.float32)

    out_c = metalstm_cell_forward(params_c, x_c, g_c, [f_c, i_c, c_c], block_c=16)
    jax.block_until_ready(out_c)
    c_rc, fic_rc = reference_forward(params_c, x_c, g_c, f_c, i_c, c_c)
    _check(out_c[0], out_c[1], c_rc, fic_rc, n_c)

    # --- Test D: hot path -- state kept in slab layout across 2 chained steps
    #     (exercises in-kernel sub-chunking, partial block, state aliasing)
    n_d = 8292   # C = 65 row-chunks; block_c=64 -> grid of 2, 2 chunks/block
    k_par, k_x1, k_x2, k_g1, k_g2, k_f, k_i, k_c, key = jax.random.split(key, 9)
    params_d = init_params(k_par, input_size, hidden_size, n_d)
    x1 = jax.random.normal(k_x1, (n_d, input_size), jnp.float32)
    x2 = jax.random.normal(k_x2, (n_d, input_size), jnp.float32)
    g1 = jax.random.normal(k_g1, (n_d,), jnp.float32)
    g2 = jax.random.normal(k_g2, (n_d,), jnp.float32)
    f0 = 0.1 * jax.random.normal(k_f, (n_d, hidden_size), jnp.float32)
    i0 = 0.1 * jax.random.normal(k_i, (n_d, hidden_size), jnp.float32)
    c0 = 0.1 * jax.random.normal(k_c, (n_d, 1), jnp.float32)

    step = jax.jit(metalstm_cell_step_slab, static_argnames=("block_c",))
    w_pack_d = pack_gate_weights(params_d)
    state = state_to_slab(f0, i0, c0)
    state = step(w_pack_d, x_to_slabs(x1), vec_to_slab(g1), state, block_c=64)
    state = step(w_pack_d, x_to_slabs(x2), vec_to_slab(g2), state, block_c=64)
    jax.block_until_ready(state)

    _, (f_r, i_r, c_r) = reference_forward(params_d, x1, g1, f0, i0, c0)
    _, (f_r, i_r, c_r) = reference_forward(params_d, x2, g2, f_r, i_r, c_r)
    assert jnp.allclose(slab_to_col(state[0], n_d), f_r, atol=1e-5, rtol=1e-5)
    assert jnp.allclose(slab_to_col(state[1], n_d), i_r, atol=1e-5, rtol=1e-5)
    assert jnp.allclose(slab_to_col(state[2], n_d), c_r, atol=1e-5, rtol=1e-5)

    print("KERNEL_OK")
</pallas_src>

<mosaic_0001>
module attributes {stable_mosaic.version = 11 : i64} {
  func.func @_metalstm_kernel(%arg0: i32, %arg1: memref<46xf32, #tpu.memory_space<smem>>, %arg2: memref<20x2x128xf32, #tpu.memory_space<vmem>>, %arg3: memref<2x128xf32, #tpu.memory_space<vmem>>, %arg4: memref<3x2x128xf32, #tpu.memory_space<vmem>>, %arg5: memref<3x2x128xf32, #tpu.memory_space<vmem>>) attributes {dimension_semantics = [#tpu.dimension_semantics<parallel>], iteration_bounds = array<i64: 1>, scalar_prefetch = 0 : i64, scratch_operands = 0 : i64, tpu.core_type = #tpu.core_type<tc>, window_params = [{transform_indices = @transform_0, window_bounds = array<i64: 46>}, {transform_indices = @transform_1, window_bounds = array<i64: 20, 2, 128>}, {transform_indices = @transform_2, window_bounds = array<i64: 2, 128>}, {transform_indices = @transform_3, window_bounds = array<i64: 3, 2, 128>}, {transform_indices = @transform_4, window_bounds = array<i64: 3, 2, 128>}]} {
    %c0 = arith.constant 0 : index
    %c0_0 = arith.constant 0 : index
    %c0_1 = arith.constant 0 : index
    %0 = vector.load %arg4[%c0, %c0_0, %c0_1] : memref<3x2x128xf32, #tpu.memory_space<vmem>>, vector<1x2x128xf32>
    %1 = vector.shape_cast %0 : vector<1x2x128xf32> to vector<2x128xf32>
    %c1 = arith.constant 1 : index
    %c0_2 = arith.constant 0 : index
    %c0_3 = arith.constant 0 : index
    %2 = vector.load %arg4[%c1, %c0_2, %c0_3] : memref<3x2x128xf32, #tpu.memory_space<vmem>>, vector<1x2x128xf32>
    %3 = vector.shape_cast %2 : vector<1x2x128xf32> to vector<2x128xf32>
    %c2 = arith.constant 2 : index
    %c0_4 = arith.constant 0 : index
    %c0_5 = arith.constant 0 : index
    %4 = vector.load %arg4[%c2, %c0_4, %c0_5] : memref<3x2x128xf32, #tpu.memory_space<vmem>>, vector<1x2x128xf32>
    %5 = vector.shape_cast %4 : vector<1x2x128xf32> to vector<2x128xf32>
    %c0_6 = arith.constant 0 : index
    %c0_7 = arith.constant 0 : index
    %6 = vector.load %arg3[%c0_6, %c0_7] : memref<2x128xf32, #tpu.memory_space<vmem>>, vector<2x128xf32>
    %c20 = arith.constant 20 : index
    %7 = memref.load %arg1[%c20] : memref<46xf32, #tpu.memory_space<smem>>
    %8 = vector.broadcast %7 : f32 to vector<2x128xf32>
    %9 = arith.mulf %8, %5 : vector<2x128xf32>
    %c21 = arith.constant 21 : index
    %10 = memref.load %arg1[%c21] : memref<46xf32, #tpu.memory_space<smem>>
    %11 = vector.broadcast %10 : f32 to vector<2x128xf32>
    %12 = arith.mulf %11, %1 : vector<2x128xf32>
    %13 = arith.addf %9, %12 : vector<2x128xf32>
    %c22 = arith.constant 22 : index
    %14 = memref.load %arg1[%c22] : memref<46xf32, #tpu.memory_space<smem>>
    %15 = vector.broadcast %14 : f32 to vector<2x128xf32>
    %16 = arith.addf %13, %15 : vector<2x128xf32>
    %c43 = arith.constant 43 : index
    %17 = memref.load %arg1[%c43] : memref<46xf32, #tpu.memory_space<smem>>
    %18 = vector.broadcast %17 : f32 to vector<2x128xf32>
    %19 = arith.mulf %18, %5 : vector<2x128xf32>
    %c44 = arith.constant 44 : index
    %20 = memref.load %arg1[%c44] : memref<46xf32, #tpu.memory_space<smem>>
    %21 = vector.broadcast %20 : f32 to vector<2x128xf32>
    %22 = arith.mulf %21, %3 : vector<2x128xf32>
    %23 = arith.addf %19, %22 : vector<2x128xf32>
    %c45 = arith.constant 45 : index
    %24 = memref.load %arg1[%c45] : memref<46xf32, #tpu.memory_space<smem>>
    %25 = vector.broadcast %24 : f32 to vector<2x128xf32>
    %26 = arith.addf %23, %25 : vector<2x128xf32>
    %c0_8 = arith.constant 0 : index
    %c0_9 = arith.constant 0 : index
    %c0_10 = arith.constant 0 : index
    %27 = vector.load %arg2[%c0_8, %c0_9, %c0_10] : memref<20x2x128xf32, #tpu.memory_space<vmem>>, vector<1x2x128xf32>
    %28 = vector.shape_cast %27 : vector<1x2x128xf32> to vector<2x128xf32>
    %c0_11 = arith.constant 0 : index
    %29 = memref.load %arg1[%c0_11] : memref<46xf32, #tpu.memory_space<smem>>
    %30 = vector.broadcast %29 : f32 to vector<2x128xf32>
    %31 = arith.mulf %30, %28 : vector<2x128xf32>
    %32 = arith.addf %16, %31 : vector<2x128xf32>
    %c23 = arith.constant 23 : index
    %33 = memref.load %arg1[%c23] : memref<46xf32, #tpu.memory_space<smem>>
    %34 = vector.broadcast %33 : f32 to vector<2x128xf32>
    %35 = arith.mulf %34, %28 : vector<2x128xf32>
    %36 = arith.addf %26, %35 : vector<2x128xf32>
    %c1_12 = arith.constant 1 : index
    %c0_13 = arith.constant 0 : index
    %c0_14 = arith.constant 0 : index
    %37 = vector.load %arg2[%c1_12, %c0_13, %c0_14] : memref<20x2x128xf32, #tpu.memory_space<vmem>>, vector<1x2x128xf32>
    %38 = vector.shape_cast %37 : vector<1x2x128xf32> to vector<2x128xf32>
    %c1_15 = arith.constant 1 : index
    %39 = memref.load %arg1[%c1_15] : memref<46xf32, #tpu.memory_space<smem>>
    %40 = vector.broadcast %39 : f32 to vector<2x128xf32>
    %41 = arith.mulf %40, %38 : vector<2x128xf32>
    %42 = arith.addf %32, %41 : vector<2x128xf32>
    %c24 = arith.constant 24 : index
    %43 = memref.load %arg1[%c24] : memref<46xf32, #tpu.memory_space<smem>>
    %44 = vector.broadcast %43 : f32 to vector<2x128xf32>
    %45 = arith.mulf %44, %38 : vector<2x128xf32>
    %46 = arith.addf %36, %45 : vector<2x128xf32>
    %c2_16 = arith.constant 2 : index
    %c0_17 = arith.constant 0 : index
    %c0_18 = arith.constant 0 : index
    %47 = vector.load %arg2[%c2_16, %c0_17, %c0_18] : memref<20x2x128xf32, #tpu.memory_space<vmem>>, vector<1x2x128xf32>
    %48 = vector.shape_cast %47 : vector<1x2x128xf32> to vector<2x128xf32>
    %c2_19 = arith.constant 2 : index
    %49 = memref.load %arg1[%c2_19] : memref<46xf32, #tpu.memory_space<smem>>
    %50 = vector.broadcast %49 : f32 to vector<2x128xf32>
    %51 = arith.mulf %50, %48 : vector<2x128xf32>
    %52 = arith.addf %42, %51 : vector<2x128xf32>
    %c25 = arith.constant 25 : index
    %53 = memref.load %arg1[%c25] : memref<46xf32, #tpu.memory_space<smem>>
    %54 = vector.broadcast %53 : f32 to vector<2x128xf32>
    %55 = arith.mulf %54, %48 : vector<2x128xf32>
    %56 = arith.addf %46, %55 : vector<2x128xf32>
    %c3 = arith.constant 3 : index
    %c0_20 = arith.constant 0 : index
    %c0_21 = arith.constant 0 : index
    %57 = vector.load %arg2[%c3, %c0_20, %c0_21] : memref<20x2x128xf32, #tpu.memory_space<vmem>>, vector<1x2x128xf32>
    %58 = vector.shape_cast %57 : vector<1x2x128xf32> to vector<2x128xf32>
    %c3_22 = arith.constant 3 : index
    %59 = memref.load %arg1[%c3_22] : memref<46xf32, #tpu.memory_space<smem>>
    %60 = vector.broadcast %59 : f32 to vector<2x128xf32>
    %61 = arith.mulf %60, %58 : vector<2x128xf32>
    %62 = arith.addf %52, %61 : vector<2x128xf32>
    %c26 = arith.constant 26 : index
    %63 = memref.load %arg1[%c26] : memref<46xf32, #tpu.memory_space<smem>>
    %64 = vector.broadcast %63 : f32 to vector<2x128xf32>
    %65 = arith.mulf %64, %58 : vector<2x128xf32>
    %66 = arith.addf %56, %65 : vector<2x128xf32>
    %c4 = arith.constant 4 : index
    %c0_23 = arith.constant 0 : index
    %c0_24 = arith.constant 0 : index
    %67 = vector.load %arg2[%c4, %c0_23, %c0_24] : memref<20x2x128xf32, #tpu.memory_space<vmem>>, vector<1x2x128xf32>
    %68 = vector.shape_cast %67 : vector<1x2x128xf32> to vector<2x128xf32>
    %c4_25 = arith.constant 4 : index
    %69 = memref.load %arg1[%c4_25] : memref<46xf32, #tpu.memory_space<smem>>
    %70 = vector.broadcast %69 : f32 to vector<2x128xf32>
    %71 = arith.mulf %70, %68 : vector<2x128xf32>
    %72 = arith.addf %62, %71 : vector<2x128xf32>
    %c27 = arith.constant 27 : index
    %73 = memref.load %arg1[%c27] : memref<46xf32, #tpu.memory_space<smem>>
    %74 = vector.broadcast %73 : f32 to vector<2x128xf32>
    %75 = arith.mulf %74, %68 : vector<2x128xf32>
    %76 = arith.addf %66, %75 : vector<2x128xf32>
    %c5 = arith.constant 5 : index
    %c0_26 = arith.constant 0 : index
    %c0_27 = arith.constant 0 : index
    %77 = vector.load %arg2[%c5, %c0_26, %c0_27] : memref<20x2x128xf32, #tpu.memory_space<vmem>>, vector<1x2x128xf32>
    %78 = vector.shape_cast %77 : vector<1x2x128xf32> to vector<2x128xf32>
    %c5_28 = arith.constant 5 : index
    %79 = memref.load %arg1[%c5_28] : memref<46xf32, #tpu.memory_space<smem>>
    %80 = vector.broadcast %79 : f32 to vector<2x128xf32>
    %81 = arith.mulf %80, %78 : vector<2x128xf32>
    %82 = arith.addf %72, %81 : vector<2x128xf32>
    %c28 = arith.constant 28 : index
    %83 = memref.load %arg1[%c28] : memref<46xf32, #tpu.memory_space<smem>>
    %84 = vector.broadcast %83 : f32 to vector<2x128xf32>
    %85 = arith.mulf %84, %78 : vector<2x128xf32>
    %86 = arith.addf %76, %85 : vector<2x128xf32>
    %c6 = arith.constant 6 : index
    %c0_29 = arith.constant 0 : index
    %c0_30 = arith.constant 0 : index
    %87 = vector.load %arg2[%c6, %c0_29, %c0_30] : memref<20x2x128xf32, #tpu.memory_space<vmem>>, vector<1x2x128xf32>
    %88 = vector.shape_cast %87 : vector<1x2x128xf32> to vector<2x128xf32>
    %c6_31 = arith.constant 6 : index
    %89 = memref.load %arg1[%c6_31] : memref<46xf32, #tpu.memory_space<smem>>
    %90 = vector.broadcast %89 : f32 to vector<2x128xf32>
    %91 = arith.mulf %90, %88 : vector<2x128xf32>
    %92 = arith.addf %82, %91 : vector<2x128xf32>
    %c29 = arith.constant 29 : index
    %93 = memref.load %arg1[%c29] : memref<46xf32, #tpu.memory_space<smem>>
    %94 = vector.broadcast %93 : f32 to vector<2x128xf32>
    %95 = arith.mulf %94, %88 : vector<2x128xf32>
    %96 = arith.addf %86, %95 : vector<2x128xf32>
    %c7 = arith.constant 7 : index
    %c0_32 = arith.constant 0 : index
    %c0_33 = arith.constant 0 : index
    %97 = vector.load %arg2[%c7, %c0_32, %c0_33] : memref<20x2x128xf32, #tpu.memory_space<vmem>>, vector<1x2x128xf32>
    %98 = vector.shape_cast %97 : vector<1x2x128xf32> to vector<2x128xf32>
    %c7_34 = arith.constant 7 : index
    %99 = memref.load %arg1[%c7_34] : memref<46xf32, #tpu.memory_space<smem>>
    %100 = vector.broadcast %99 : f32 to vector<2x128xf32>
    %101 = arith.mulf %100, %98 : vector<2x128xf32>
    %102 = arith.addf %92, %101 : vector<2x128xf32>
    %c30 = arith.constant 30 : index
    %103 = memref.load %arg1[%c30] : memref<46xf32, #tpu.memory_space<smem>>
    %104 = vector.broadcast %103 : f32 to vector<2x128xf32>
    %105 = arith.mulf %104, %98 : vector<2x128xf32>
    %106 = arith.addf %96, %105 : vector<2x128xf32>
    %c8 = arith.constant 8 : index
    %c0_35 = arith.constant 0 : index
    %c0_36 = arith.constant 0 : index
    %107 = vector.load %arg2[%c8, %c0_35, %c0_36] : memref<20x2x128xf32, #tpu.memory_space<vmem>>, vector<1x2x128xf32>
    %108 = vector.shape_cast %107 : vector<1x2x128xf32> to vector<2x128xf32>
    %c8_37 = arith.constant 8 : index
    %109 = memref.load %arg1[%c8_37] : memref<46xf32, #tpu.memory_space<smem>>
    %110 = vector.broadcast %109 : f32 to vector<2x128xf32>
    %111 = arith.mulf %110, %108 : vector<2x128xf32>
    %112 = arith.addf %102, %111 : vector<2x128xf32>
    %c31 = arith.constant 31 : index
    %113 = memref.load %arg1[%c31] : memref<46xf32, #tpu.memory_space<smem>>
    %114 = vector.broadcast %113 : f32 to vector<2x128xf32>
    %115 = arith.mulf %114, %108 : vector<2x128xf32>
    %116 = arith.addf %106, %115 : vector<2x128xf32>
    %c9 = arith.constant 9 : index
    %c0_38 = arith.constant 0 : index
    %c0_39 = arith.constant 0 : index
    %117 = vector.load %arg2[%c9, %c0_38, %c0_39] : memref<20x2x128xf32, #tpu.memory_space<vmem>>, vector<1x2x128xf32>
    %118 = vector.shape_cast %117 : vector<1x2x128xf32> to vector<2x128xf32>
    %c9_40 = arith.constant 9 : index
    %119 = memref.load %arg1[%c9_40] : memref<46xf32, #tpu.memory_space<smem>>
    %120 = vector.broadcast %119 : f32 to vector<2x128xf32>
    %121 = arith.mulf %120, %118 : vector<2x128xf32>
    %122 = arith.addf %112, %121 : vector<2x128xf32>
    %c32 = arith.constant 32 : index
    %123 = memref.load %arg1[%c32] : memref<46xf32, #tpu.memory_space<smem>>
    %124 = vector.broadcast %123 : f32 to vector<2x128xf32>
    %125 = arith.mulf %124, %118 : vector<2x128xf32>
    %126 = arith.addf %116, %125 : vector<2x128xf32>
    %c10 = arith.constant 10 : index
    %c0_41 = arith.constant 0 : index
    %c0_42 = arith.constant 0 : index
    %127 = vector.load %arg2[%c10, %c0_41, %c0_42] : memref<20x2x128xf32, #tpu.memory_space<vmem>>, vector<1x2x128xf32>
    %128 = vector.shape_cast %127 : vector<1x2x128xf32> to vector<2x128xf32>
    %c10_43 = arith.constant 10 : index
    %129 = memref.load %arg1[%c10_43] : memref<46xf32, #tpu.memory_space<smem>>
    %130 = vector.broadcast %129 : f32 to vector<2x128xf32>
    %131 = arith.mulf %130, %128 : vector<2x128xf32>
    %132 = arith.addf %122, %131 : vector<2x128xf32>
    %c33 = arith.constant 33 : index
    %133 = memref.load %arg1[%c33] : memref<46xf32, #tpu.memory_space<smem>>
    %134 = vector.broadcast %133 : f32 to vector<2x128xf32>
    %135 = arith.mulf %134, %128 : vector<2x128xf32>
    %136 = arith.addf %126, %135 : vector<2x128xf32>
    %c11 = arith.constant 11 : index
    %c0_44 = arith.constant 0 : index
    %c0_45 = arith.constant 0 : index
    %137 = vector.load %arg2[%c11, %c0_44, %c0_45] : memref<20x2x128xf32, #tpu.memory_space<vmem>>, vector<1x2x128xf32>
    %138 = vector.shape_cast %137 : vector<1x2x128xf32> to vector<2x128xf32>
    %c11_46 = arith.constant 11 : index
    %139 = memref.load %arg1[%c11_46] : memref<46xf32, #tpu.memory_space<smem>>
    %140 = vector.broadcast %139 : f32 to vector<2x128xf32>
    %141 = arith.mulf %140, %138 : vector<2x128xf32>
    %142 = arith.addf %132, %141 : vector<2x128xf32>
    %c34 = arith.constant 34 : index
    %143 = memref.load %arg1[%c34] : memref<46xf32, #tpu.memory_space<smem>>
    %144 = vector.broadcast %143 : f32 to vector<2x128xf32>
    %145 = arith.mulf %144, %138 : vector<2x128xf32>
    %146 = arith.addf %136, %145 : vector<2x128xf32>
    %c12 = arith.constant 12 : index
    %c0_47 = arith.constant 0 : index
    %c0_48 = arith.constant 0 : index
    %147 = vector.load %arg2[%c12, %c0_47, %c0_48] : memref<20x2x128xf32, #tpu.memory_space<vmem>>, vector<1x2x128xf32>
    %148 = vector.shape_cast %147 : vector<1x2x128xf32> to vector<2x128xf32>
    %c12_49 = arith.constant 12 : index
    %149 = memref.load %arg1[%c12_49] : memref<46xf32, #tpu.memory_space<smem>>
    %150 = vector.broadcast %149 : f32 to vector<2x128xf32>
    %151 = arith.mulf %150, %148 : vector<2x128xf32>
    %152 = arith.addf %142, %151 : vector<2x128xf32>
    %c35 = arith.constant 35 : index
    %153 = memref.load %arg1[%c35] : memref<46xf32, #tpu.memory_space<smem>>
    %154 = vector.broadcast %153 : f32 to vector<2x128xf32>
    %155 = arith.mulf %154, %148 : vector<2x128xf32>
    %156 = arith.addf %146, %155 : vector<2x128xf32>
    %c13 = arith.constant 13 : index
    %c0_50 = arith.constant 0 : index
    %c0_51 = arith.constant 0 : index
    %157 = vector.load %arg2[%c13, %c0_50, %c0_51] : memref<20x2x128xf32, #tpu.memory_space<vmem>>, vector<1x2x128xf32>
    %158 = vector.shape_cast %157 : vector<1x2x128xf32> to vector<2x128xf32>
    %c13_52 = arith.constant 13 : index
    %159 = memref.load %arg1[%c13_52] : memref<46xf32, #tpu.memory_space<smem>>
    %160 = vector.broadcast %159 : f32 to vector<2x128xf32>
    %161 = arith.mulf %160, %158 : vector<2x128xf32>
    %162 = arith.addf %152, %161 : vector<2x128xf32>
    %c36 = arith.constant 36 : index
    %163 = memref.load %arg1[%c36] : memref<46xf32, #tpu.memory_space<smem>>
    %164 = vector.broadcast %163 : f32 to vector<2x128xf32>
    %165 = arith.mulf %164, %158 : vector<2x128xf32>
    %166 = arith.addf %156, %165 : vector<2x128xf32>
    %c14 = arith.constant 14 : index
    %c0_53 = arith.constant 0 : index
    %c0_54 = arith.constant 0 : index
    %167 = vector.load %arg2[%c14, %c0_53, %c0_54] : memref<20x2x128xf32, #tpu.memory_space<vmem>>, vector<1x2x128xf32>
    %168 = vector.shape_cast %167 : vector<1x2x128xf32> to vector<2x128xf32>
    %c14_55 = arith.constant 14 : index
    %169 = memref.load %arg1[%c14_55] : memref<46xf32, #tpu.memory_space<smem>>
    %170 = vector.broadcast %169 : f32 to vector<2x128xf32>
    %171 = arith.mulf %170, %168 : vector<2x128xf32>
    %172 = arith.addf %162, %171 : vector<2x128xf32>
    %c37 = arith.constant 37 : index
    %173 = memref.load %arg1[%c37] : memref<46xf32, #tpu.memory_space<smem>>
    %174 = vector.broadcast %173 : f32 to vector<2x128xf32>
    %175 = arith.mulf %174, %168 : vector<2x128xf32>
    %176 = arith.addf %166, %175 : vector<2x128xf32>
    %c15 = arith.constant 15 : index
    %c0_56 = arith.constant 0 : index
    %c0_57 = arith.constant 0 : index
    %177 = vector.load %arg2[%c15, %c0_56, %c0_57] : memref<20x2x128xf32, #tpu.memory_space<vmem>>, vector<1x2x128xf32>
    %178 = vector.shape_cast %177 : vector<1x2x128xf32> to vector<2x128xf32>
    %c15_58 = arith.constant 15 : index
    %179 = memref.load %arg1[%c15_58] : memref<46xf32, #tpu.memory_space<smem>>
    %180 = vector.broadcast %179 : f32 to vector<2x128xf32>
    %181 = arith.mulf %180, %178 : vector<2x128xf32>
    %182 = arith.addf %172, %181 : vector<2x128xf32>
    %c38 = arith.constant 38 : index
    %183 = memref.load %arg1[%c38] : memref<46xf32, #tpu.memory_space<smem>>
    %184 = vector.broadcast %183 : f32 to vector<2x128xf32>
    %185 = arith.mulf %184, %178 : vector<2x128xf32>
    %186 = arith.addf %176, %185 : vector<2x128xf32>
    %c16 = arith.constant 16 : index
    %c0_59 = arith.constant 0 : index
    %c0_60 = arith.constant 0 : index
    %187 = vector.load %arg2[%c16, %c0_59, %c0_60] : memref<20x2x128xf32, #tpu.memory_space<vmem>>, vector<1x2x128xf32>
    %188 = vector.shape_cast %187 : vector<1x2x128xf32> to vector<2x128xf32>
    %c16_61 = arith.constant 16 : index
    %189 = memref.load %arg1[%c16_61] : memref<46xf32, #tpu.memory_space<smem>>
    %190 = vector.broadcast %189 : f32 to vector<2x128xf32>
    %191 = arith.mulf %190, %188 : vector<2x128xf32>
    %192 = arith.addf %182, %191 : vector<2x128xf32>
    %c39 = arith.constant 39 : index
    %193 = memref.load %arg1[%c39] : memref<46xf32, #tpu.memory_space<smem>>
    %194 = vector.broadcast %193 : f32 to vector<2x128xf32>
    %195 = arith.mulf %194, %188 : vector<2x128xf32>
    %196 = arith.addf %186, %195 : vector<2x128xf32>
    %c17 = arith.constant 17 : index
    %c0_62 = arith.constant 0 : index
    %c0_63 = arith.constant 0 : index
    %197 = vector.load %arg2[%c17, %c0_62, %c0_63] : memref<20x2x128xf32, #tpu.memory_space<vmem>>, vector<1x2x128xf32>
    %198 = vector.shape_cast %197 : vector<1x2x128xf32> to vector<2x128xf32>
    %c17_64 = arith.constant 17 : index
    %199 = memref.load %arg1[%c17_64] : memref<46xf32, #tpu.memory_space<smem>>
    %200 = vector.broadcast %199 : f32 to vector<2x128xf32>
    %201 = arith.mulf %200, %198 : vector<2x128xf32>
    %202 = arith.addf %192, %201 : vector<2x128xf32>
    %c40 = arith.constant 40 : index
    %203 = memref.load %arg1[%c40] : memref<46xf32, #tpu.memory_space<smem>>
    %204 = vector.broadcast %203 : f32 to vector<2x128xf32>
    %205 = arith.mulf %204, %198 : vector<2x128xf32>
    %206 = arith.addf %196, %205 : vector<2x128xf32>
    %c18 = arith.constant 18 : index
    %c0_65 = arith.constant 0 : index
    %c0_66 = arith.constant 0 : index
    %207 = vector.load %arg2[%c18, %c0_65, %c0_66] : memref<20x2x128xf32, #tpu.memory_space<vmem>>, vector<1x2x128xf32>
    %208 = vector.shape_cast %207 : vector<1x2x128xf32> to vector<2x128xf32>
    %c18_67 = arith.constant 18 : index
    %209 = memref.load %arg1[%c18_67] : memref<46xf32, #tpu.memory_space<smem>>
    %210 = vector.broadcast %209 : f32 to vector<2x128xf32>
    %211 = arith.mulf %210, %208 : vector<2x128xf32>
    %212 = arith.addf %202, %211 : vector<2x128xf32>
    %c41 = arith.constant 41 : index
    %213 = memref.load %arg1[%c41] : memref<46xf32, #tpu.memory_space<smem>>
    %214 = vector.broadcast %213 : f32 to vector<2x128xf32>
    %215 = arith.mulf %214, %208 : vector<2x128xf32>
    %216 = arith.addf %206, %215 : vector<2x128xf32>
    %c19 = arith.constant 19 : index
    %c0_68 = arith.constant 0 : index
    %c0_69 = arith.constant 0 : index
    %217 = vector.load %arg2[%c19, %c0_68, %c0_69] : memref<20x2x128xf32, #tpu.memory_space<vmem>>, vector<1x2x128xf32>
    %218 = vector.shape_cast %217 : vector<1x2x128xf32> to vector<2x128xf32>
    %c19_70 = arith.constant 19 : index
    %219 = memref.load %arg1[%c19_70] : memref<46xf32, #tpu.memory_space<smem>>
    %220 = vector.broadcast %219 : f32 to vector<2x128xf32>
    %221 = arith.mulf %220, %218 : vector<2x128xf32>
    %222 = arith.addf %212, %221 : vector<2x128xf32>
    %c42 = arith.constant 42 : index
    %223 = memref.load %arg1[%c42] : memref<46xf32, #tpu.memory_space<smem>>
    %224 = vector.broadcast %223 : f32 to vector<2x128xf32>
    %225 = arith.mulf %224, %218 : vector<2x128xf32>
    %226 = arith.addf %216, %225 : vector<2x128xf32>
    %227 = arith.negf %222 : vector<2x128xf32>
    %228 = math.exp %227 : vector<2x128xf32>
    %cst = arith.constant 1.000000e+00 : f32
    %229 = vector.broadcast %cst : f32 to vector<2x128xf32>
    %230 = arith.addf %229, %228 : vector<2x128xf32>
    %231 = arith.divf %229, %230 : vector<2x128xf32>
    %232 = arith.mulf %231, %5 : vector<2x128xf32>
    %233 = arith.negf %226 : vector<2x128xf32>
    %234 = math.exp %233 : vector<2x128xf32>
    %cst_71 = arith.constant 1.000000e+00 : f32
    %235 = vector.broadcast %cst_71 : f32 to vector<2x128xf32>
    %236 = arith.addf %235, %234 : vector<2x128xf32>
    %237 = arith.divf %235, %236 : vector<2x128xf32>
    %238 = arith.mulf %237, %6 : vector<2x128xf32>
    %239 = arith.subf %232, %238 : vector<2x128xf32>
    %c0_72 = arith.constant 0 : index
    %c0_73 = arith.constant 0 : index
    %c0_74 = arith.constant 0 : index
    %240 = vector.load %arg5[%c0_72, %c0_73, %c0_74] : memref<3x2x128xf32, #tpu.memory_space<vmem>>, vector<1x2x128xf32>
    %241 = vector.shape_cast %240 : vector<1x2x128xf32> to vector<2x128xf32>
    %242 = vector.shape_cast %222 : vector<2x128xf32> to vector<1x2x128xf32>
    tpu.vector_store %arg5[%c0_72, %c0_73, %c0_74], %242 {strides = array<i32>} : memref<3x2x128xf32, #tpu.memory_space<vmem>>, vector<1x2x128xf32>,
    %c1_75 = arith.constant 1 : index
    %c0_76 = arith.constant 0 : index
    %c0_77 = arith.constant 0 : index
    %243 = vector.load %arg5[%c1_75, %c0_76, %c0_77] : memref<3x2x128xf32, #tpu.memory_space<vmem>>, vector<1x2x128xf32>
    %244 = vector.shape_cast %243 : vector<1x2x128xf32> to vector<2x128xf32>
    %245 = vector.shape_cast %226 : vector<2x128xf32> to vector<1x2x128xf32>
    tpu.vector_store %arg5[%c1_75, %c0_76, %c0_77], %245 {strides = array<i32>} : memref<3x2x128xf32, #tpu.memory_space<vmem>>, vector<1x2x128xf32>,
    %c2_78 = arith.constant 2 : index
    %c0_79 = arith.constant 0 : index
    %c0_80 = arith.constant 0 : index
    %246 = vector.load %arg5[%c2_78, %c0_79, %c0_80] : memref<3x2x128xf32, #tpu.memory_space<vmem>>, vector<1x2x128xf32>
    %247 = vector.shape_cast %246 : vector<1x2x128xf32> to vector<2x128xf32>
    %248 = vector.shape_cast %239 : vector<2x128xf32> to vector<1x2x128xf32>
    tpu.vector_store %arg5[%c2_78, %c0_79, %c0_80], %248 {strides = array<i32>} : memref<3x2x128xf32, #tpu.memory_space<vmem>>, vector<1x2x128xf32>,
    return
  }
  func.func @transform_0(%arg0: i32) -> i32 {
    %c0_i32 = arith.constant 0 : i32
    %c0_i32_0 = arith.constant 0 : i32
    return %c0_i32 : i32
  }
  func.func @transform_1(%arg0: i32) -> (i32, i32, i32) {
    %c0_i32 = arith.constant 0 : i32
    %c0_i32_0 = arith.constant 0 : i32
    %c0_i32_1 = arith.constant 0 : i32
    return %c0_i32, %arg0, %c0_i32_0 : i32, i32, i32
  }
  func.func @transform_2(%arg0: i32) -> (i32, i32) {
    %c0_i32 = arith.constant 0 : i32
    %c0_i32_0 = arith.constant 0 : i32
    return %arg0, %c0_i32 : i32, i32
  }
  func.func @transform_3(%arg0: i32) -> (i32, i32, i32) {
    %c0_i32 = arith.constant 0 : i32
    %c0_i32_0 = arith.constant 0 : i32
    %c0_i32_1 = arith.constant 0 : i32
    return %c0_i32, %arg0, %c0_i32_0 : i32, i32, i32
  }
  func.func @transform_4(%arg0: i32) -> (i32, i32, i32) {
    %c0_i32 = arith.constant 0 : i32
    %c0_i32_0 = arith.constant 0 : i32
    %c0_i32_1 = arith.constant 0 : i32
    return %c0_i32, %arg0, %c0_i32_0 : i32, i32, i32
  }
}

</mosaic_0001>

<bundles_post_ra>
// kernel: metalstm_cell_forward.1
= control target key start
LH: loop header
LB: loop body
LE: loop exit
PB: predicated region body
PF: predicated region fallthrough
CT: control target
= control target key end

     0   :  { %9 = vsyncpa [#allocation3], 0  ;;  %s611_s0 = inlined_call_operand.vmem [shape: f32[46], index: 0, kind: input, shape index: {}]   ;;  %s612_s1 = inlined_call_operand.vmem [shape: f32[20,2,128], index: 1, kind: input, shape index: {}]   ;;  %s613_s2 = inlined_call_operand.vmem [shape: f32[2,128], index: 2, kind: input, shape index: {}]   ;;  %s614_s3 = inlined_call_operand.vmem [shape: f32[3,2,128], index: 3, kind: input, shape index: {}, may-alias: {3,4}]   ;;  %s615_s4 = inlined_call_operand.vmem [shape: f32[3,2,128], index: 4, kind: output, shape index: {}, may-alias: {3,4}]  }
   0x1   :  { %s16_s17 = sshll.u32 %s611_s0, 4  ;;  %s17_s17 = int_to_ptr.vmem [resolvable:$true] %s16_s17 }
   0x2   :  { %s359_s18 = scalar_lea.vmem %s17_s17, 16  ;;  %p364_p1 = scmp.lt.s32.totalorder %s17_s17, %s17_s17 }
   0x3   :  { %p360_p0 = scmp.ne.s32.totalorder %s17_s17, %s359_s18  ;;  %p365_p2 = scmp.lt.s32.totalorder %s359_s18, %s359_s18 }
   0x5   :  { %p366_p3 = por %p365_p2, %p364_p1 }
   0x7   :  { %p367_p4 = pnand %p366_p3, %p360_p0 }
   0x9   :  { %370 = shalt.err (!%p367_p4)
}
   0xa   :  { %s373_s19 = smov [#allocation2]  }
   0xb   :  { %19 = dma.vmem_to_smem %s17_s17, 16, %s373_s19, [#allocation3]  }
   0xc   :  { %371 = dma.done.wait [#allocation3], 16  }
   0xd   :  { %372 = vsyncadd [#allocation3], 4294967280 }
   0xe   :  { %29 = sfence }
   0xf   :  { %s282_s20 = sld [smem:[#allocation2 + $0x14]]  ;;  %s283_s21 = sld [smem:[#allocation2 + $0x15]]  ;;  %v30_v0 = vld [vmem:[%s614_s3] sm:$0x3]  ;;  %v414_v1 = vld [vmem:[%s614_s3 + $0x4] sm:$0x3] }
  0x10   :  { %s402_s22 = sld [smem:[#allocation2 + $0x16]]  ;;  %s285_s23 = sld [smem:[#allocation2 + $0x2b]]  ;;  %v280_v2 = vld [vmem:[%s614_s3 + $0x2] sm:$0x3]  ;;  %v56_v8 = vld [vmem:[%s612_s1] sm:$0x3] }
  0x11   :  { %s286_s24 = sld [smem:[#allocation2 + $0x2c]]  ;;  %s404_s0 = sld [smem:[#allocation2 + $0x2d]]  ;;  %v289_v12 = vld [vmem:[%s612_s1 + $0x2] sm:$0x3]  ;;  %v292_v21 = vld [vmem:[%s612_s1 + $0x4] sm:$0x3] }
  0x12   :  { %s57_s27 = sld [smem:[#allocation2]]  ;;  %s409_s28 = sld [smem:[#allocation2 + $0x17]]  ;;  %v295_v28 = vld [vmem:[%s612_s1 + $0x6] sm:$0x3]  ;;  %v298_v35 = vld [vmem:[%s612_s1 + $0x8] sm:$0x3] }
  0x13   :  { %s416_s5 = sld [smem:[#allocation2 + $0x1]]  ;;  %s418_s6 = sld [smem:[#allocation2 + $0x18]]  ;;  %v301_v42 = vld [vmem:[%s612_s1 + $0xa] sm:$0x3]  ;;  %v304_v49 = vld [vmem:[%s612_s1 + $0xc] sm:$0x3] }
  0x14   :  { %s420_s7 = sld [smem:[#allocation2 + $0x2]]  ;;  %s422_s8 = sld [smem:[#allocation2 + $0x19]]  ;;  %v307_v56 = vld [vmem:[%s612_s1 + $0xe] sm:$0x3]  ;;  %v310_v63 = vld [vmem:[%s612_s1 + $0x10] sm:$0x3] }
  0x15   :  { %v37_v3 = vstv %s282_s20  ;;  %v40_v4 = vstv %s283_s21  ;;  %s427_s11 = sld [smem:[#allocation2 + $0x3]]  ;;  %s429_s12 = sld [smem:[#allocation2 + $0x1a]] }
  0x16   :  { %v38_v5 = vmul.f32 %v414_v1, %v37_v3  ;;  %v41_v6 = vmul.f32 %v40_v4, %v30_v0  ;;  %v47_v7 = vstv %s285_s23  ;;  %s435_s15 = sld [smem:[#allocation2 + $0x4]]  ;;  %v44_v9 = vstv %s402_s22  ;;  %s442_s17 = sld [smem:[#allocation2 + $0x1b]] }
  0x17   :  { %v48_v10 = vmul.f32 %v414_v1, %v47_v7  ;;  %v50_v11 = vstv %s286_s24  ;;  %s444_s18 = sld [smem:[#allocation2 + $0x5]]  ;;  %v54_v17 = vstv %s404_s0  ;;  %s453_s21 = sld [smem:[#allocation2 + $0x1c]]  ;;  %v313_v7 = vld [vmem:[%s612_s1 + $0x12] sm:$0x3] }
  0x18   :  { %v42_v13 = vadd.f32 %v41_v6, %v38_v5  ;;  %v51_v14 = vmul.f32 %v280_v2, %v50_v11  ;;  %v58_v15 = vstv %s57_s27  ;;  %v62_v16 = vstv %s409_s28  ;;  %s455_s22 = sld [smem:[#allocation2 + $0x6]]  ;;  %s463_s0 = sld [smem:[#allocation2 + $0x1d]] }
  0x19   :  { %v59_v18 = vmul.f32 %v58_v15, %v56_v8  ;;  %v68_v19 = vstv %s416_s5  ;;  %v72_v20 = vstv %s418_s6  ;;  %v63_v24 = vmul.f32 %v62_v16, %v56_v8  ;;  %s465_s25 = sld [smem:[#allocation2 + $0x7]]  ;;  %s472_s28 = sld [smem:[#allocation2 + $0x1e]] }
  0x1a   :  { %v45_v22 = vadd.f32 %v44_v9, %v42_v13  ;;  %v52_v23 = vadd.f32 %v51_v14, %v48_v10  ;;  %v69_v25 = vmul.f32 %v289_v12, %v68_v19  ;;  %v78_v26 = vstv %s420_s7  ;;  %s474_s29 = sld [smem:[#allocation2 + $0x8]]  ;;  %s481_s6 = sld [smem:[#allocation2 + $0x1f]]  ;;  %v316_v14 = vld [vmem:[%s612_s1 + $0x14] sm:$0x3] }
  0x1b   :  { %v82_v27 = vstv %s422_s8  ;;  %v88_v29 = vstv %s427_s11  ;;  %v73_v32 = vmul.f32 %v289_v12, %v72_v20  ;;  %v79_v33 = vmul.f32 %v292_v21, %v78_v26  ;;  %s483_s7 = sld [smem:[#allocation2 + $0x9]]  ;;  %s490_s10 = sld [smem:[#allocation2 + $0x20]] }
  0x1c   :  { %v55_v30 = vadd.f32 %v54_v17, %v52_v23  ;;  %v60_v31 = vadd.f32 %v59_v18, %v45_v22  ;;  %v92_v34 = vstv %s429_s12  ;;  %v98_v36 = vstv %s435_s15  ;;  %s492_s11 = sld [smem:[#allocation2 + $0xa]]  ;;  %s499_s14 = sld [smem:[#allocation2 + $0x21]] }
  0x1d   :  { %v83_v39 = vmul.f32 %v292_v21, %v82_v27  ;;  %v89_v40 = vmul.f32 %v295_v28, %v88_v29  ;;  %v102_v41 = vstv %s442_s17  ;;  %v108_v43 = vstv %s444_s18  ;;  %s501_s15 = sld [smem:[#allocation2 + $0xb]]  ;;  %s508_s17 = sld [smem:[#allocation2 + $0x22]]  ;;  %v319_v21 = vld [vmem:[%s612_s1 + $0x16] sm:$0x3] }
  0x1e   :  { %v64_v37 = vadd.f32 %v63_v24, %v55_v30  ;;  %v70_v38 = vadd.f32 %v69_v25, %v60_v31  ;;  %v93_v46 = vmul.f32 %v295_v28, %v92_v34  ;;  %v99_v47 = vmul.f32 %v298_v35, %v98_v36  ;;  %s510_s18 = sld [smem:[#allocation2 + $0xc]]  ;;  %v322_v28 = vld [vmem:[%s612_s1 + $0x18] sm:$0x3] }
  0x1f   :  { %v112_v48 = vstv %s453_s21  ;;  %v118_v50 = vstv %s455_s22  ;;  %v103_v53 = vmul.f32 %v298_v35, %v102_v41  ;;  %v109_v54 = vmul.f32 %v301_v42, %v108_v43  ;;  %s517_s21 = sld [smem:[#allocation2 + $0x23]]  ;;  %s519_s22 = sld [smem:[#allocation2 + $0xd]]  ;;  %v325_v35 = vld [vmem:[%s612_s1 + $0x1a] sm:$0x3] }
  0x20   :  { %v74_v44 = vadd.f32 %v73_v32, %v64_v37  ;;  %v80_v45 = vadd.f32 %v79_v33, %v70_v38  ;;  %v122_v55 = vstv %s463_s0  ;;  %v128_v57 = vstv %s465_s25  ;;  %s526_s0 = sld [smem:[#allocation2 + $0x24]]  ;;  %s528_s25 = sld [smem:[#allocation2 + $0xe]] }
  0x21   :  { %v113_v60 = vmul.f32 %v301_v42, %v112_v48  ;;  %v119_v61 = vmul.f32 %v304_v49, %v118_v50  ;;  %v132_v62 = vstv %s472_s28  ;;  %v138_v0 = vstv %s474_s29  ;;  %s535_s28 = sld [smem:[#allocation2 + $0x25]]  ;;  %s537_s29 = sld [smem:[#allocation2 + $0xf]]  ;;  %v328_v42 = vld [vmem:[%s612_s1 + $0x1c] sm:$0x3] }
  0x22   :  { %v84_v51 = vadd.f32 %v83_v39, %v74_v44  ;;  %v90_v52 = vadd.f32 %v89_v40, %v80_v45  ;;  %v123_v4 = vmul.f32 %v304_v49, %v122_v55  ;;  %v129_v5 = vmul.f32 %v307_v56, %v128_v57  ;;  %v331_v49 = vld [vmem:[%s612_s1 + $0x1e] sm:$0x3] }
  0x23   :  { %v142_v6 = vstv %s481_s6  ;;  %v148_v8 = vstv %s483_s7  ;;  %v133_v11 = vmul.f32 %v307_v56, %v132_v62  ;;  %v139_v12 = vmul.f32 %v310_v63, %v138_v0  ;;  %s544_s6 = sld [smem:[#allocation2 + $0x26]]  ;;  %s546_s7 = sld [smem:[#allocation2 + $0x10]]  ;;  %v334_v56 = vld [vmem:[%s612_s1 + $0x20] sm:$0x3] }
  0x24   :  { %v94_v58 = vadd.f32 %v93_v46, %v84_v51  ;;  %v100_v59 = vadd.f32 %v99_v47, %v90_v52  ;;  %v152_v13 = vstv %s490_s10  ;;  %v158_v15 = vstv %s492_s11  ;;  %s553_s10 = sld [smem:[#allocation2 + $0x27]]  ;;  %s555_s11 = sld [smem:[#allocation2 + $0x11]] }
  0x25   :  { %v143_v18 = vmul.f32 %v310_v63, %v142_v6  ;;  %v149_v19 = vmul.f32 %v313_v7, %v148_v8  ;;  %v162_v20 = vstv %s499_s14  ;;  %v168_v22 = vstv %s501_s15  ;;  %s562_s14 = sld [smem:[#allocation2 + $0x28]]  ;;  %s564_s15 = sld [smem:[#allocation2 + $0x12]]  ;;  %v337_v63 = vld [vmem:[%s612_s1 + $0x22] sm:$0x3] }
  0x26   :  { %v104_v2 = vadd.f32 %v103_v53, %v94_v58  ;;  %v110_v3 = vadd.f32 %v109_v54, %v100_v59  ;;  %v153_v25 = vmul.f32 %v313_v7, %v152_v13  ;;  %v159_v26 = vmul.f32 %v316_v14, %v158_v15  ;;  %v340_v7 = vld [vmem:[%s612_s1 + $0x24] sm:$0x3] }
  0x27   :  { %v172_v27 = vstv %s508_s17  ;;  %v178_v29 = vstv %s510_s18  ;;  %v163_v32 = vmul.f32 %v316_v14, %v162_v20  ;;  %v169_v33 = vmul.f32 %v319_v21, %v168_v22  ;;  %s571_s17 = sld [smem:[#allocation2 + $0x29]]  ;;  %s573_s18 = sld [smem:[#allocation2 + $0x13]]  ;;  %v343_v14 = vld [vmem:[%s612_s1 + $0x26] sm:$0x3] }
  0x28   :  { %v114_v9 = vadd.f32 %v113_v60, %v104_v2  ;;  %v120_v10 = vadd.f32 %v119_v61, %v110_v3  ;;  %v182_v34 = vstv %s517_s21  ;;  %v188_v36 = vstv %s519_s22  ;;  %s580_s21 = sld [smem:[#allocation2 + $0x2a]] }
  0x29   :  { %v173_v39 = vmul.f32 %v319_v21, %v172_v27  ;;  %v179_v40 = vmul.f32 %v322_v28, %v178_v29  ;;  %v192_v41 = vstv %s526_s0  ;;  %v198_v43 = vstv %s528_s25 }
  0x2a   :  { %v124_v16 = vadd.f32 %v123_v4, %v114_v9  ;;  %v130_v17 = vadd.f32 %v129_v5, %v120_v10  ;;  %v183_v46 = vmul.f32 %v322_v28, %v182_v34  ;;  %v189_v47 = vmul.f32 %v325_v35, %v188_v36 }
  0x2b   :  { %v202_v48 = vstv %s535_s28  ;;  %v208_v50 = vstv %s537_s29  ;;  %v193_v53 = vmul.f32 %v325_v35, %v192_v41  ;;  %v199_v54 = vmul.f32 %v328_v42, %v198_v43 }
  0x2c   :  { %v134_v23 = vadd.f32 %v133_v11, %v124_v16  ;;  %v140_v24 = vadd.f32 %v139_v12, %v130_v17  ;;  %v212_v55 = vstv %s544_s6  ;;  %v218_v57 = vstv %s546_s7 }
  0x2d   :  { %v203_v60 = vmul.f32 %v328_v42, %v202_v48  ;;  %v209_v61 = vmul.f32 %v331_v49, %v208_v50  ;;  %v222_v62 = vstv %s553_s10  ;;  %v228_v0 = vstv %s555_s11 }
  0x2e   :  { %v144_v30 = vadd.f32 %v143_v18, %v134_v23  ;;  %v150_v31 = vadd.f32 %v149_v19, %v140_v24  ;;  %v213_v4 = vmul.f32 %v331_v49, %v212_v55  ;;  %v219_v5 = vmul.f32 %v334_v56, %v218_v57 }
  0x2f   :  { %v232_v6 = vstv %s562_s14  ;;  %v238_v8 = vstv %s564_s15  ;;  %v223_v11 = vmul.f32 %v334_v56, %v222_v62  ;;  %v229_v12 = vmul.f32 %v337_v63, %v228_v0 }
  0x30   :  { %v154_v37 = vadd.f32 %v153_v25, %v144_v30  ;;  %v160_v38 = vadd.f32 %v159_v26, %v150_v31  ;;  %v242_v13 = vstv %s571_s17  ;;  %v248_v15 = vstv %s573_s18 }
  0x31   :  { %v233_v18 = vmul.f32 %v337_v63, %v232_v6  ;;  %v239_v19 = vmul.f32 %v340_v7, %v238_v8  ;;  %v252_v20 = vstv %s580_s21  ;;  %v243_v23 = vmul.f32 %v340_v7, %v242_v13 }
  0x32   :  { %v164_v44 = vadd.f32 %v163_v32, %v154_v37  ;;  %v170_v45 = vadd.f32 %v169_v33, %v160_v38  ;;  %v249_v24 = vmul.f32 %v343_v14, %v248_v15  ;;  %v253_v27 = vmul.f32 %v343_v14, %v252_v20  ;;  %v35_v38 = vld [vmem:[%s613_s2] sm:$0x3] }
  0x34   :  { %v174_v51 = vadd.f32 %v173_v39, %v164_v44  ;;  %v180_v52 = vadd.f32 %v179_v40, %v170_v45 }
  0x36   :  { %v184_v58 = vadd.f32 %v183_v46, %v174_v51  ;;  %v190_v59 = vadd.f32 %v189_v47, %v180_v52 }
  0x38   :  { %v194_v2 = vadd.f32 %v193_v53, %v184_v58  ;;  %v200_v3 = vadd.f32 %v199_v54, %v190_v59 }
  0x3a   :  { %v204_v9 = vadd.f32 %v203_v60, %v194_v2  ;;  %v210_v10 = vadd.f32 %v209_v61, %v200_v3 }
  0x3c   :  { %v214_v16 = vadd.f32 %v213_v4, %v204_v9  ;;  %v220_v17 = vadd.f32 %v219_v5, %v210_v10 }
  0x3e   :  { %v224_v21 = vadd.f32 %v223_v11, %v214_v16  ;;  %v230_v22 = vadd.f32 %v229_v12, %v220_v17 }
  0x40   :  { %v234_v25 = vadd.f32 %v233_v18, %v224_v21  ;;  %v240_v26 = vadd.f32 %v239_v19, %v230_v22 }
  0x42   :  { %v244_v28 = vadd.f32 %v243_v23, %v234_v25  ;;  %v250_v29 = vadd.f32 %v249_v24, %v240_v26 }
  0x44   :  { %v254_v30 = vadd.f32 %v253_v27, %v244_v28  ;;  %v346_v31 = vmul.f32 -1.442695, %v250_v29  ;;  %270 = vst [vmem:[%s615_s4] sm:$0x3] %v250_v29 }
  0x46   :  { %351 = vpow2.f32 %v346_v31  ;;  %v347_v32 = vmul.f32 -1.442695, %v254_v30  ;;  %348 = vst [vmem:[%s615_s4 + $0x2] sm:$0x3] %v254_v30 }
  0x48   :  { %353 = vpow2.f32 %v347_v32 }
  0x50   :  { %v352_v33 = vpop.eup %351 }
  0x51   :  { %v258_v34 = vadd.f32 1.0, %v352_v33 }
  0x52   :  { %v354_v35 = vpop.eup %353 }
  0x53   :  { %355 = vrcp.f32 %v258_v34  ;;  %v265_v36 = vadd.f32 1.0, %v354_v35 }
  0x55   :  { %357 = vrcp.f32 %v265_v36 }
  0x5d   :  { %v356_v37 = vpop.eup %355 }
  0x5e   :  { %v261_v39 = vmul.f32 %v356_v37, %v414_v1 }
  0x5f   :  { %v358_v40 = vpop.eup %357 }
  0x60   :  { %v268_v41 = vmul.f32 %v358_v40, %v35_v38 }
  0x62   :  { %v269_v42 = vsub.f32 %v261_v39, %v268_v41 }
  0x64   :  { %349 = vst [vmem:[%s615_s4 + $0x4] sm:$0x3] %v269_v42 }
  0x65   :  { %279 = vsyncpa [#allocation3], 1 }

</bundles_post_ra>
